<compile_context>
chip_gen: v6e
topology: v6e:2x2x1
jax: 0.10.0
libtpu: 0.0.40
codegen_flags: <defaults>
</compile_context>

<pallas_src>
import jax
import jax.numpy as jnp
from jax import lax
from jax.experimental import pallas as pl
from jax.experimental.pallas import tpu as pltpu

HIDDEN = 64
INPUT = 2


def gru_fc_kernel(x_ref, h0_ref, wih_ref, whh_rz_ref, whh_n_ref,
                  b_rzn_ref, bhh_n_ref, wfc_ref, bfc_ref, out_ref):
    SB, I = x_ref.shape          # SB = S * B, time-major rows (s*B + b)
    B, H = h0_ref.shape
    S = SB // B
    H2 = 2 * H

    # ---------- hoisted input projection: ONE fused matmul, off the serial path
    gx = jnp.dot(x_ref[...], wih_ref[...],
                 preferred_element_type=jnp.float32) + b_rzn_ref[...]   # (S*B, 3H)
    gx_rz = gx[:, :H2]           # (S*B, 2H)  lanes [0, 128)
    gx_n = gx[:, H2:]            # (S*B, H)   clean second-vreg slice

    # Hoist recurrent weights / remaining bias (single loads, register-resident).
    whh_rz = whh_rz_ref[...]     # (H, 2H) fused [r|z]
    whh_n = whh_n_ref[...]       # (H, H)
    bhh_n = bhh_n_ref[...]       # (1, H)

    # ---------- serial recurrence: only the truly sequential work stays here
    h = h0_ref[...]              # (B, H)
    hs = []
    # S is tiny and static: full static unroll -> static row slices of gx,
    # adjacent steps' MXU/EUP/VPU work can interleave.
    for t in range(S):
        lo = t * B
        gh_rz = jnp.dot(h, whh_rz, preferred_element_type=jnp.float32)        # (B, 2H)
        gh_n = jnp.dot(h, whh_n, preferred_element_type=jnp.float32) + bhh_n  # (B, H)
        rz = jax.nn.sigmoid(gx_rz[lo:lo + B, :] + gh_rz)   # one sigmoid over 128 lanes
        r = rz[:, :H]
        z = pltpu.roll(rz, H, axis=1)[:, :H]               # XLU lane-rotate recovers z
        n = jnp.tanh(gx_n[lo:lo + B, :] + r * gh_n)
        h = n + z * (h - n)                                 # == (1-z)*n + z*h
        hs.append(h)

    # ---------- FC epilogue: gather register-resident hidden states, one matmul,
    # one lane-dense-ish store (output is tiny either way).
    h_all = jnp.concatenate(hs, axis=0)                     # (S*B, H)
    # (1, H) x (S*B, H) contracting H  ->  (1, S*B)
    y = lax.dot_general(wfc_ref[...], h_all,
                        dimension_numbers=(((1,), (1,)), ((), ())),
                        preferred_element_type=jnp.float32)
    out_ref[...] = y + bfc_ref[0, 0]


@jax.jit
def gru_fc(x, h0, w_ih, w_hh, b_ih, b_hh, w_fc, b_fc):
    """x: (B, S, I) batch_first; torch-layout params:
       w_ih (3H, I), w_hh (3H, H), b_ih (3H,), b_hh (3H,), w_fc (1, H), b_fc (1,).
       Returns (B, S, 1), matching torch's fc(rnn_output)."""
    B, S, I = x.shape
    H = h0.shape[-1]

    # Host-side packing (PyTorch gate order [r, z, n]), pre-transposed for x @ W.
    wih_rzn = w_ih.T                                        # (I, 3H) columns [r|z|n]
    whh_t = w_hh.T                                          # (H, 3H)
    whh_rz = whh_t[:, :2 * H]                               # (H, 2H) fused [r|z]
    whh_n = whh_t[:, 2 * H:]                                # (H, H)
    # Pre-fold biases: r/z use (b_ih + b_hh); n keeps only b_hh_n inside r*(...).
    b_rzn = jnp.concatenate(
        [b_ih[:2 * H] + b_hh[:2 * H], b_ih[2 * H:]]).reshape(1, 3 * H)
    bhh_n = b_hh[2 * H:].reshape(1, H)
    wfc = w_fc.reshape(1, H)
    bfc = b_fc.reshape(1, 1)

    # Time-major, flattened rows (s*B + b): per-step slices are leading-dim only.
    x_2d = jnp.transpose(x, (1, 0, 2)).reshape(S * B, I)

    vmem = pl.BlockSpec(memory_space=pltpu.MemorySpace.VMEM)
    smem = pl.BlockSpec(memory_space=pltpu.MemorySpace.SMEM)

    out_flat = pl.pallas_call(
        gru_fc_kernel,
        out_shape=jax.ShapeDtypeStruct((1, S * B), jnp.float32),
        in_specs=[vmem] * 8 + [smem],
        out_specs=vmem,
    )(x_2d, h0, wih_rzn, whh_rz, whh_n, b_rzn, bhh_n, wfc, bfc)

    # (1, S*B) -> (S, B) -> (B, S, 1)   (cheap wrapper-side layout plumbing)
    return jnp.transpose(out_flat.reshape(S, B), (1, 0))[:, :, None]


def ref_forward(x, h0, w_ih, w_hh, b_ih, b_hh, w_fc, b_fc):
    """Pure-JAX reference of the same GRU + FC (PyTorch semantics)."""
    H = h0.shape[-1]
    wih_t = w_ih.T
    whh_t = w_hh.T

    def step(h, x_t):
        gx = x_t @ wih_t + b_ih
        gh = h @ whh_t + b_hh
        r = jax.nn.sigmoid(gx[:, :H] + gh[:, :H])
        z = jax.nn.sigmoid(gx[:, H:2 * H] + gh[:, H:2 * H])
        n = jnp.tanh(gx[:, 2 * H:] + r * gh[:, 2 * H:])
        h_new = (1.0 - z) * n + z * h
        y = h_new @ w_fc.T + b_fc
        return h_new, y

    _, ys = lax.scan(step, h0, jnp.transpose(x, (1, 0, 2)))
    return jnp.transpose(ys, (1, 0, 2))


if __name__ == "__main__":
    B, S, I, H = 2, 8, INPUT, HIDDEN
    key = jax.random.PRNGKey(0)
    kx, kh, k1, k2, k3, k4, k5, k6 = jax.random.split(key, 8)

    # Input sequence (batch_first). The torch module draws h0 = randn(1, B, H)
    # inside forward; here it is drawn deterministically and passed in as (B, H).
    x = jax.random.normal(kx, (B, S, I), dtype=jnp.float32)
    h0 = jax.random.normal(kh, (1, B, H), dtype=jnp.float32)[0]

    # Deterministic parameter init mimicking torch's U(-1/sqrt(H), 1/sqrt(H)).
    k_scale = 1.0 / jnp.sqrt(jnp.float32(H))
    w_ih = jax.random.uniform(k1, (3 * H, I), jnp.float32, -k_scale, k_scale)
    w_hh = jax.random.uniform(k2, (3 * H, H), jnp.float32, -k_scale, k_scale)
    b_ih = jax.random.uniform(k3, (3 * H,), jnp.float32, -k_scale, k_scale)
    b_hh = jax.random.uniform(k4, (3 * H,), jnp.float32, -k_scale, k_scale)
    w_fc = jax.random.uniform(k5, (1, H), jnp.float32, -k_scale, k_scale)
    b_fc = jax.random.uniform(k6, (1,), jnp.float32, -k_scale, k_scale)

    out = gru_fc(x, h0, w_ih, w_hh, b_ih, b_hh, w_fc, b_fc)
    out = jax.block_until_ready(out)

    ref = ref_forward(x, h0, w_ih, w_hh, b_ih, b_hh, w_fc, b_fc)
    assert out.shape == (B, S, 1)
    assert jnp.allclose(out, ref, atol=2e-5, rtol=1e-5), "kernel mismatch vs reference"

    print("KERNEL_OK")
</pallas_src>

<mosaic_0001>
module attributes {stable_mosaic.version = 11 : i64} {
  func.func @gru_fc_kernel(%arg0: memref<16x2xf32, #tpu.memory_space<vmem>>, %arg1: memref<2x64xf32, #tpu.memory_space<vmem>>, %arg2: memref<2x192xf32, #tpu.memory_space<vmem>>, %arg3: memref<64x128xf32, #tpu.memory_space<vmem>>, %arg4: memref<64x64xf32, #tpu.memory_space<vmem>>, %arg5: memref<1x192xf32, #tpu.memory_space<vmem>>, %arg6: memref<1x64xf32, #tpu.memory_space<vmem>>, %arg7: memref<1x64xf32, #tpu.memory_space<vmem>>, %arg8: memref<1x1xf32, #tpu.memory_space<smem>>, %arg9: memref<1x16xf32, #tpu.memory_space<vmem>>) attributes {dimension_semantics = [], scalar_prefetch = 0 : i64, scratch_operands = 0 : i64, tpu.core_type = #tpu.core_type<tc>} {
    %c0 = arith.constant 0 : index
    %c0_0 = arith.constant 0 : index
    %0 = vector.load %arg0[%c0, %c0_0] : memref<16x2xf32, #tpu.memory_space<vmem>>, vector<16x2xf32>
    %c0_1 = arith.constant 0 : index
    %c0_2 = arith.constant 0 : index
    %1 = vector.load %arg2[%c0_1, %c0_2] : memref<2x192xf32, #tpu.memory_space<vmem>>, vector<2x192xf32>
    %cst = arith.constant dense<0.000000e+00> : vector<16x192xf32>
    %2 = tpu.matmul %0, %1, %cst {dimension_numbers = #tpu.dot_dimension_numbers<[1], [0], [0], [1], [0, 0, 1, 1], [], []>} : vector<16x2xf32>, vector<2x192xf32>, vector<16x192xf32> -> vector<16x192xf32>
    %c0_3 = arith.constant 0 : index
    %c0_4 = arith.constant 0 : index
    %3 = vector.load %arg5[%c0_3, %c0_4] : memref<1x192xf32, #tpu.memory_space<vmem>>, vector<1x192xf32>
    %4 = vector.broadcast %3 : vector<1x192xf32> to vector<16x192xf32>
    %5 = arith.addf %2, %4 : vector<16x192xf32>
    %6 = vector.extract_strided_slice %5 {offsets = [0, 0], sizes = [16, 128], strides = [1, 1]} : vector<16x192xf32> to vector<16x128xf32>
    %7 = vector.extract_strided_slice %5 {offsets = [0, 128], sizes = [16, 64], strides = [1, 1]} : vector<16x192xf32> to vector<16x64xf32>
    %c0_5 = arith.constant 0 : index
    %c0_6 = arith.constant 0 : index
    %8 = vector.load %arg3[%c0_5, %c0_6] : memref<64x128xf32, #tpu.memory_space<vmem>>, vector<64x128xf32>
    %c0_7 = arith.constant 0 : index
    %c0_8 = arith.constant 0 : index
    %9 = vector.load %arg4[%c0_7, %c0_8] : memref<64x64xf32, #tpu.memory_space<vmem>>, vector<64x64xf32>
    %c0_9 = arith.constant 0 : index
    %c0_10 = arith.constant 0 : index
    %10 = vector.load %arg6[%c0_9, %c0_10] : memref<1x64xf32, #tpu.memory_space<vmem>>, vector<1x64xf32>
    %c0_11 = arith.constant 0 : index
    %c0_12 = arith.constant 0 : index
    %11 = vector.load %arg1[%c0_11, %c0_12] : memref<2x64xf32, #tpu.memory_space<vmem>>, vector<2x64xf32>
    %cst_13 = arith.constant dense<0.000000e+00> : vector<2x128xf32>
    %12 = tpu.matmul %11, %8, %cst_13 {dimension_numbers = #tpu.dot_dimension_numbers<[1], [0], [0], [1], [0, 0, 1, 1], [], []>} : vector<2x64xf32>, vector<64x128xf32>, vector<2x128xf32> -> vector<2x128xf32>
    %cst_14 = arith.constant dense<0.000000e+00> : vector<2x64xf32>
    %13 = tpu.matmul %11, %9, %cst_14 {dimension_numbers = #tpu.dot_dimension_numbers<[1], [0], [0], [1], [0, 0, 1, 1], [], []>} : vector<2x64xf32>, vector<64x64xf32>, vector<2x64xf32> -> vector<2x64xf32>
    %14 = vector.broadcast %10 : vector<1x64xf32> to vector<2x64xf32>
    %15 = arith.addf %13, %14 : vector<2x64xf32>
    %16 = vector.extract_strided_slice %6 {offsets = [0, 0], sizes = [2, 128], strides = [1, 1]} : vector<16x128xf32> to vector<2x128xf32>
    %17 = arith.addf %16, %12 : vector<2x128xf32>
    %18 = arith.negf %17 : vector<2x128xf32>
    %19 = math.exp %18 : vector<2x128xf32>
    %cst_15 = arith.constant 1.000000e+00 : f32
    %20 = vector.broadcast %cst_15 : f32 to vector<2x128xf32>
    %21 = arith.addf %20, %19 : vector<2x128xf32>
    %22 = arith.divf %20, %21 : vector<2x128xf32>
    %23 = vector.extract_strided_slice %22 {offsets = [0, 0], sizes = [2, 64], strides = [1, 1]} : vector<2x128xf32> to vector<2x64xf32>
    %c64_i32 = arith.constant 64 : i32
    %24 = tpu.dynamic_rotate %22 by %c64_i32 dim 1 : vector<2x128xf32>, i32 -> vector<2x128xf32>
    %25 = vector.extract_strided_slice %24 {offsets = [0, 0], sizes = [2, 64], strides = [1, 1]} : vector<2x128xf32> to vector<2x64xf32>
    %26 = vector.extract_strided_slice %7 {offsets = [0, 0], sizes = [2, 64], strides = [1, 1]} : vector<16x64xf32> to vector<2x64xf32>
    %27 = arith.mulf %23, %15 : vector<2x64xf32>
    %28 = arith.addf %26, %27 : vector<2x64xf32>
    %29 = math.tanh %28 : vector<2x64xf32>
    %30 = arith.subf %11, %29 : vector<2x64xf32>
    %31 = arith.mulf %25, %30 : vector<2x64xf32>
    %32 = arith.addf %29, %31 : vector<2x64xf32>
    %cst_16 = arith.constant dense<0.000000e+00> : vector<2x128xf32>
    %33 = tpu.matmul %32, %8, %cst_16 {dimension_numbers = #tpu.dot_dimension_numbers<[1], [0], [0], [1], [0, 0, 1, 1], [], []>} : vector<2x64xf32>, vector<64x128xf32>, vector<2x128xf32> -> vector<2x128xf32>
    %cst_17 = arith.constant dense<0.000000e+00> : vector<2x64xf32>
    %34 = tpu.matmul %32, %9, %cst_17 {dimension_numbers = #tpu.dot_dimension_numbers<[1], [0], [0], [1], [0, 0, 1, 1], [], []>} : vector<2x64xf32>, vector<64x64xf32>, vector<2x64xf32> -> vector<2x64xf32>
    %35 = vector.broadcast %10 : vector<1x64xf32> to vector<2x64xf32>
    %36 = arith.addf %34, %35 : vector<2x64xf32>
    %37 = vector.extract_strided_slice %6 {offsets = [2, 0], sizes = [2, 128], strides = [1, 1]} : vector<16x128xf32> to vector<2x128xf32>
    %38 = arith.addf %37, %33 : vector<2x128xf32>
    %39 = arith.negf %38 : vector<2x128xf32>
    %40 = math.exp %39 : vector<2x128xf32>
    %cst_18 = arith.constant 1.000000e+00 : f32
    %41 = vector.broadcast %cst_18 : f32 to vector<2x128xf32>
    %42 = arith.addf %41, %40 : vector<2x128xf32>
    %43 = arith.divf %41, %42 : vector<2x128xf32>
    %44 = vector.extract_strided_slice %43 {offsets = [0, 0], sizes = [2, 64], strides = [1, 1]} : vector<2x128xf32> to vector<2x64xf32>
    %c64_i32_19 = arith.constant 64 : i32
    %45 = tpu.dynamic_rotate %43 by %c64_i32_19 dim 1 : vector<2x128xf32>, i32 -> vector<2x128xf32>
    %46 = vector.extract_strided_slice %45 {offsets = [0, 0], sizes = [2, 64], strides = [1, 1]} : vector<2x128xf32> to vector<2x64xf32>
    %47 = vector.extract_strided_slice %7 {offsets = [2, 0], sizes = [2, 64], strides = [1, 1]} : vector<16x64xf32> to vector<2x64xf32>
    %48 = arith.mulf %44, %36 : vector<2x64xf32>
    %49 = arith.addf %47, %48 : vector<2x64xf32>
    %50 = math.tanh %49 : vector<2x64xf32>
    %51 = arith.subf %32, %50 : vector<2x64xf32>
    %52 = arith.mulf %46, %51 : vector<2x64xf32>
    %53 = arith.addf %50, %52 : vector<2x64xf32>
    %cst_20 = arith.constant dense<0.000000e+00> : vector<2x128xf32>
    %54 = tpu.matmul %53, %8, %cst_20 {dimension_numbers = #tpu.dot_dimension_numbers<[1], [0], [0], [1], [0, 0, 1, 1], [], []>} : vector<2x64xf32>, vector<64x128xf32>, vector<2x128xf32> -> vector<2x128xf32>
    %cst_21 = arith.constant dense<0.000000e+00> : vector<2x64xf32>
    %55 = tpu.matmul %53, %9, %cst_21 {dimension_numbers = #tpu.dot_dimension_numbers<[1], [0], [0], [1], [0, 0, 1, 1], [], []>} : vector<2x64xf32>, vector<64x64xf32>, vector<2x64xf32> -> vector<2x64xf32>
    %56 = vector.broadcast %10 : vector<1x64xf32> to vector<2x64xf32>
    %57 = arith.addf %55, %56 : vector<2x64xf32>
    %58 = vector.extract_strided_slice %6 {offsets = [4, 0], sizes = [2, 128], strides = [1, 1]} : vector<16x128xf32> to vector<2x128xf32>
    %59 = arith.addf %58, %54 : vector<2x128xf32>
    %60 = arith.negf %59 : vector<2x128xf32>
    %61 = math.exp %60 : vector<2x128xf32>
    %cst_22 = arith.constant 1.000000e+00 : f32
    %62 = vector.broadcast %cst_22 : f32 to vector<2x128xf32>
    %63 = arith.addf %62, %61 : vector<2x128xf32>
    %64 = arith.divf %62, %63 : vector<2x128xf32>
    %65 = vector.extract_strided_slice %64 {offsets = [0, 0], sizes = [2, 64], strides = [1, 1]} : vector<2x128xf32> to vector<2x64xf32>
    %c64_i32_23 = arith.constant 64 : i32
    %66 = tpu.dynamic_rotate %64 by %c64_i32_23 dim 1 : vector<2x128xf32>, i32 -> vector<2x128xf32>
    %67 = vector.extract_strided_slice %66 {offsets = [0, 0], sizes = [2, 64], strides = [1, 1]} : vector<2x128xf32> to vector<2x64xf32>
    %68 = vector.extract_strided_slice %7 {offsets = [4, 0], sizes = [2, 64], strides = [1, 1]} : vector<16x64xf32> to vector<2x64xf32>
    %69 = arith.mulf %65, %57 : vector<2x64xf32>
    %70 = arith.addf %68, %69 : vector<2x64xf32>
    %71 = math.tanh %70 : vector<2x64xf32>
    %72 = arith.subf %53, %71 : vector<2x64xf32>
    %73 = arith.mulf %67, %72 : vector<2x64xf32>
    %74 = arith.addf %71, %73 : vector<2x64xf32>
    %cst_24 = arith.constant dense<0.000000e+00> : vector<2x128xf32>
    %75 = tpu.matmul %74, %8, %cst_24 {dimension_numbers = #tpu.dot_dimension_numbers<[1], [0], [0], [1], [0, 0, 1, 1], [], []>} : vector<2x64xf32>, vector<64x128xf32>, vector<2x128xf32> -> vector<2x128xf32>
    %cst_25 = arith.constant dense<0.000000e+00> : vector<2x64xf32>
    %76 = tpu.matmul %74, %9, %cst_25 {dimension_numbers = #tpu.dot_dimension_numbers<[1], [0], [0], [1], [0, 0, 1, 1], [], []>} : vector<2x64xf32>, vector<64x64xf32>, vector<2x64xf32> -> vector<2x64xf32>
    %77 = vector.broadcast %10 : vector<1x64xf32> to vector<2x64xf32>
    %78 = arith.addf %76, %77 : vector<2x64xf32>
    %79 = vector.extract_strided_slice %6 {offsets = [6, 0], sizes = [2, 128], strides = [1, 1]} : vector<16x128xf32> to vector<2x128xf32>
    %80 = arith.addf %79, %75 : vector<2x128xf32>
    %81 = arith.negf %80 : vector<2x128xf32>
    %82 = math.exp %81 : vector<2x128xf32>
    %cst_26 = arith.constant 1.000000e+00 : f32
    %83 = vector.broadcast %cst_26 : f32 to vector<2x128xf32>
    %84 = arith.addf %83, %82 : vector<2x128xf32>
    %85 = arith.divf %83, %84 : vector<2x128xf32>
    %86 = vector.extract_strided_slice %85 {offsets = [0, 0], sizes = [2, 64], strides = [1, 1]} : vector<2x128xf32> to vector<2x64xf32>
    %c64_i32_27 = arith.constant 64 : i32
    %87 = tpu.dynamic_rotate %85 by %c64_i32_27 dim 1 : vector<2x128xf32>, i32 -> vector<2x128xf32>
    %88 = vector.extract_strided_slice %87 {offsets = [0, 0], sizes = [2, 64], strides = [1, 1]} : vector<2x128xf32> to vector<2x64xf32>
    %89 = vector.extract_strided_slice %7 {offsets = [6, 0], sizes = [2, 64], strides = [1, 1]} : vector<16x64xf32> to vector<2x64xf32>
    %90 = arith.mulf %86, %78 : vector<2x64xf32>
    %91 = arith.addf %89, %90 : vector<2x64xf32>
    %92 = math.tanh %91 : vector<2x64xf32>
    %93 = arith.subf %74, %92 : vector<2x64xf32>
    %94 = arith.mulf %88, %93 : vector<2x64xf32>
    %95 = arith.addf %92, %94 : vector<2x64xf32>
    %cst_28 = arith.constant dense<0.000000e+00> : vector<2x128xf32>
    %96 = tpu.matmul %95, %8, %cst_28 {dimension_numbers = #tpu.dot_dimension_numbers<[1], [0], [0], [1], [0, 0, 1, 1], [], []>} : vector<2x64xf32>, vector<64x128xf32>, vector<2x128xf32> -> vector<2x128xf32>
    %cst_29 = arith.constant dense<0.000000e+00> : vector<2x64xf32>
    %97 = tpu.matmul %95, %9, %cst_29 {dimension_numbers = #tpu.dot_dimension_numbers<[1], [0], [0], [1], [0, 0, 1, 1], [], []>} : vector<2x64xf32>, vector<64x64xf32>, vector<2x64xf32> -> vector<2x64xf32>
    %98 = vector.broadcast %10 : vector<1x64xf32> to vector<2x64xf32>
    %99 = arith.addf %97, %98 : vector<2x64xf32>
    %100 = vector.extract_strided_slice %6 {offsets = [8, 0], sizes = [2, 128], strides = [1, 1]} : vector<16x128xf32> to vector<2x128xf32>
    %101 = arith.addf %100, %96 : vector<2x128xf32>
    %102 = arith.negf %101 : vector<2x128xf32>
    %103 = math.exp %102 : vector<2x128xf32>
    %cst_30 = arith.constant 1.000000e+00 : f32
    %104 = vector.broadcast %cst_30 : f32 to vector<2x128xf32>
    %105 = arith.addf %104, %103 : vector<2x128xf32>
    %106 = arith.divf %104, %105 : vector<2x128xf32>
    %107 = vector.extract_strided_slice %106 {offsets = [0, 0], sizes = [2, 64], strides = [1, 1]} : vector<2x128xf32> to vector<2x64xf32>
    %c64_i32_31 = arith.constant 64 : i32
    %108 = tpu.dynamic_rotate %106 by %c64_i32_31 dim 1 : vector<2x128xf32>, i32 -> vector<2x128xf32>
    %109 = vector.extract_strided_slice %108 {offsets = [0, 0], sizes = [2, 64], strides = [1, 1]} : vector<2x128xf32> to vector<2x64xf32>
    %110 = vector.extract_strided_slice %7 {offsets = [8, 0], sizes = [2, 64], strides = [1, 1]} : vector<16x64xf32> to vector<2x64xf32>
    %111 = arith.mulf %107, %99 : vector<2x64xf32>
    %112 = arith.addf %110, %111 : vector<2x64xf32>
    %113 = math.tanh %112 : vector<2x64xf32>
    %114 = arith.subf %95, %113 : vector<2x64xf32>
    %115 = arith.mulf %109, %114 : vector<2x64xf32>
    %116 = arith.addf %113, %115 : vector<2x64xf32>
    %cst_32 = arith.constant dense<0.000000e+00> : vector<2x128xf32>
    %117 = tpu.matmul %116, %8, %cst_32 {dimension_numbers = #tpu.dot_dimension_numbers<[1], [0], [0], [1], [0, 0, 1, 1], [], []>} : vector<2x64xf32>, vector<64x128xf32>, vector<2x128xf32> -> vector<2x128xf32>
    %cst_33 = arith.constant dense<0.000000e+00> : vector<2x64xf32>
    %118 = tpu.matmul %116, %9, %cst_33 {dimension_numbers = #tpu.dot_dimension_numbers<[1], [0], [0], [1], [0, 0, 1, 1], [], []>} : vector<2x64xf32>, vector<64x64xf32>, vector<2x64xf32> -> vector<2x64xf32>
    %119 = vector.broadcast %10 : vector<1x64xf32> to vector<2x64xf32>
    %120 = arith.addf %118, %119 : vector<2x64xf32>
    %121 = vector.extract_strided_slice %6 {offsets = [10, 0], sizes = [2, 128], strides = [1, 1]} : vector<16x128xf32> to vector<2x128xf32>
    %122 = arith.addf %121, %117 : vector<2x128xf32>
    %123 = arith.negf %122 : vector<2x128xf32>
    %124 = math.exp %123 : vector<2x128xf32>
    %cst_34 = arith.constant 1.000000e+00 : f32
    %125 = vector.broadcast %cst_34 : f32 to vector<2x128xf32>
    %126 = arith.addf %125, %124 : vector<2x128xf32>
    %127 = arith.divf %125, %126 : vector<2x128xf32>
    %128 = vector.extract_strided_slice %127 {offsets = [0, 0], sizes = [2, 64], strides = [1, 1]} : vector<2x128xf32> to vector<2x64xf32>
    %c64_i32_35 = arith.constant 64 : i32
    %129 = tpu.dynamic_rotate %127 by %c64_i32_35 dim 1 : vector<2x128xf32>, i32 -> vector<2x128xf32>
    %130 = vector.extract_strided_slice %129 {offsets = [0, 0], sizes = [2, 64], strides = [1, 1]} : vector<2x128xf32> to vector<2x64xf32>
    %131 = vector.extract_strided_slice %7 {offsets = [10, 0], sizes = [2, 64], strides = [1, 1]} : vector<16x64xf32> to vector<2x64xf32>
    %132 = arith.mulf %128, %120 : vector<2x64xf32>
    %133 = arith.addf %131, %132 : vector<2x64xf32>
    %134 = math.tanh %133 : vector<2x64xf32>
    %135 = arith.subf %116, %134 : vector<2x64xf32>
    %136 = arith.mulf %130, %135 : vector<2x64xf32>
    %137 = arith.addf %134, %136 : vector<2x64xf32>
    %cst_36 = arith.constant dense<0.000000e+00> : vector<2x128xf32>
    %138 = tpu.matmul %137, %8, %cst_36 {dimension_numbers = #tpu.dot_dimension_numbers<[1], [0], [0], [1], [0, 0, 1, 1], [], []>} : vector<2x64xf32>, vector<64x128xf32>, vector<2x128xf32> -> vector<2x128xf32>
    %cst_37 = arith.constant dense<0.000000e+00> : vector<2x64xf32>
    %139 = tpu.matmul %137, %9, %cst_37 {dimension_numbers = #tpu.dot_dimension_numbers<[1], [0], [0], [1], [0, 0, 1, 1], [], []>} : vector<2x64xf32>, vector<64x64xf32>, vector<2x64xf32> -> vector<2x64xf32>
    %140 = vector.broadcast %10 : vector<1x64xf32> to vector<2x64xf32>
    %141 = arith.addf %139, %140 : vector<2x64xf32>
    %142 = vector.extract_strided_slice %6 {offsets = [12, 0], sizes = [2, 128], strides = [1, 1]} : vector<16x128xf32> to vector<2x128xf32>
    %143 = arith.addf %142, %138 : vector<2x128xf32>
    %144 = arith.negf %143 : vector<2x128xf32>
    %145 = math.exp %144 : vector<2x128xf32>
    %cst_38 = arith.constant 1.000000e+00 : f32
    %146 = vector.broadcast %cst_38 : f32 to vector<2x128xf32>
    %147 = arith.addf %146, %145 : vector<2x128xf32>
    %148 = arith.divf %146, %147 : vector<2x128xf32>
    %149 = vector.extract_strided_slice %148 {offsets = [0, 0], sizes = [2, 64], strides = [1, 1]} : vector<2x128xf32> to vector<2x64xf32>
    %c64_i32_39 = arith.constant 64 : i32
    %150 = tpu.dynamic_rotate %148 by %c64_i32_39 dim 1 : vector<2x128xf32>, i32 -> vector<2x128xf32>
    %151 = vector.extract_strided_slice %150 {offsets = [0, 0], sizes = [2, 64], strides = [1, 1]} : vector<2x128xf32> to vector<2x64xf32>
    %152 = vector.extract_strided_slice %7 {offsets = [12, 0], sizes = [2, 64], strides = [1, 1]} : vector<16x64xf32> to vector<2x64xf32>
    %153 = arith.mulf %149, %141 : vector<2x64xf32>
    %154 = arith.addf %152, %153 : vector<2x64xf32>
    %155 = math.tanh %154 : vector<2x64xf32>
    %156 = arith.subf %137, %155 : vector<2x64xf32>
    %157 = arith.mulf %151, %156 : vector<2x64xf32>
    %158 = arith.addf %155, %157 : vector<2x64xf32>
    %cst_40 = arith.constant dense<0.000000e+00> : vector<2x128xf32>
    %159 = tpu.matmul %158, %8, %cst_40 {dimension_numbers = #tpu.dot_dimension_numbers<[1], [0], [0], [1], [0, 0, 1, 1], [], []>} : vector<2x64xf32>, vector<64x128xf32>, vector<2x128xf32> -> vector<2x128xf32>
    %cst_41 = arith.constant dense<0.000000e+00> : vector<2x64xf32>
    %160 = tpu.matmul %158, %9, %cst_41 {dimension_numbers = #tpu.dot_dimension_numbers<[1], [0], [0], [1], [0, 0, 1, 1], [], []>} : vector<2x64xf32>, vector<64x64xf32>, vector<2x64xf32> -> vector<2x64xf32>
    %161 = vector.broadcast %10 : vector<1x64xf32> to vector<2x64xf32>
    %162 = arith.addf %160, %161 : vector<2x64xf32>
    %163 = vector.extract_strided_slice %6 {offsets = [14, 0], sizes = [2, 128], strides = [1, 1]} : vector<16x128xf32> to vector<2x128xf32>
    %164 = arith.addf %163, %159 : vector<2x128xf32>
    %165 = arith.negf %164 : vector<2x128xf32>
    %166 = math.exp %165 : vector<2x128xf32>
    %cst_42 = arith.constant 1.000000e+00 : f32
    %167 = vector.broadcast %cst_42 : f32 to vector<2x128xf32>
    %168 = arith.addf %167, %166 : vector<2x128xf32>
    %169 = arith.divf %167, %168 : vector<2x128xf32>
    %170 = vector.extract_strided_slice %169 {offsets = [0, 0], sizes = [2, 64], strides = [1, 1]} : vector<2x128xf32> to vector<2x64xf32>
    %c64_i32_43 = arith.constant 64 : i32
    %171 = tpu.dynamic_rotate %169 by %c64_i32_43 dim 1 : vector<2x128xf32>, i32 -> vector<2x128xf32>
    %172 = vector.extract_strided_slice %171 {offsets = [0, 0], sizes = [2, 64], strides = [1, 1]} : vector<2x128xf32> to vector<2x64xf32>
    %173 = vector.extract_strided_slice %7 {offsets = [14, 0], sizes = [2, 64], strides = [1, 1]} : vector<16x64xf32> to vector<2x64xf32>
    %174 = arith.mulf %170, %162 : vector<2x64xf32>
    %175 = arith.addf %173, %174 : vector<2x64xf32>
    %176 = math.tanh %175 : vector<2x64xf32>
    %177 = arith.subf %158, %176 : vector<2x64xf32>
    %178 = arith.mulf %172, %177 : vector<2x64xf32>
    %179 = arith.addf %176, %178 : vector<2x64xf32>
    %180 = tpu.concatenate %32, %53, %74, %95, %116, %137, %158, %179 in 0 : vector<2x64xf32>, vector<2x64xf32>, vector<2x64xf32>, vector<2x64xf32>, vector<2x64xf32>, vector<2x64xf32>, vector<2x64xf32>, vector<2x64xf32> -> vector<16x64xf32>
    %c0_44 = arith.constant 0 : index
    %c0_45 = arith.constant 0 : index
    %181 = vector.load %arg7[%c0_44, %c0_45] : memref<1x64xf32, #tpu.memory_space<vmem>>, vector<1x64xf32>
    %cst_46 = arith.constant dense<0.000000e+00> : vector<1x16xf32>
    %182 = tpu.matmul %181, %180, %cst_46 {dimension_numbers = #tpu.dot_dimension_numbers<[1], [1], [0], [0], [0, 0, 1, 0], [], []>} : vector<1x64xf32>, vector<16x64xf32>, vector<1x16xf32> -> vector<1x16xf32>
    %c0_47 = arith.constant 0 : index
    %c0_48 = arith.constant 0 : index
    %183 = memref.load %arg8[%c0_47, %c0_48] : memref<1x1xf32, #tpu.memory_space<smem>>
    %184 = vector.broadcast %183 : f32 to vector<1x16xf32>
    %185 = arith.addf %182, %184 : vector<1x16xf32>
    %c0_49 = arith.constant 0 : index
    %c0_50 = arith.constant 0 : index
    %186 = vector.load %arg9[%c0_49, %c0_50] : memref<1x16xf32, #tpu.memory_space<vmem>>, vector<1x16xf32>
    tpu.vector_store %arg9[%c0_49, %c0_50], %185 {strides = array<i32>} : memref<1x16xf32, #tpu.memory_space<vmem>>, vector<1x16xf32>,
    return
  }
}

</mosaic_0001>

<bundles_post_ra>
// kernel: gru_fc.1
= control target key start
LH: loop header
LB: loop body
LE: loop exit
PB: predicated region body
PF: predicated region fallthrough
CT: control target
= control target key end

     0   :  { %v2186_v0 = vmov 0.0   ;;  %vm64_vm0 = vcmask 1041408   ;;  %vm2187_vm1 = vmmov 0   ;;  %vm57_vm2 = vcmask 15360   ;;  %s2188_s25 = smov 64   ;;  %s2744_s3 = inlined_call_operand.vmem [shape: f32[64,128], index: 3, kind: input, shape index: {}]   ;;  %s2745_s2 = inlined_call_operand.vmem [shape: f32[2,192], index: 2, kind: input, shape index: {}]   ;;  %s2746_s0 = inlined_call_operand.vmem [shape: f32[16,2], index: 0, kind: input, shape index: {}]   ;;  %s2747_s4 = inlined_call_operand.vmem [shape: f32[64,64], index: 4, kind: input, shape index: {}]   ;;  %s2748_s1 = inlined_call_operand.vmem [shape: f32[2,64], index: 1, kind: input, shape index: {}]   ;;  %s2749_s5 = inlined_call_operand.vmem [shape: f32[1,192], index: 5, kind: input, shape index: {}]   ;;  %s2750_s6 = inlined_call_operand.vmem [shape: f32[1,64], index: 6, kind: input, shape index: {}]   ;;  %s2751_s7 = inlined_call_operand.vmem [shape: f32[1,64], index: 7, kind: input, shape index: {}]   ;;  %s2752_s8 = inlined_call_operand.<no memory space> [shape: f32[1,1], index: 8, kind: input, shape index: {}]   ;;  %s2753_s9 = inlined_call_operand.vmem [shape: f32[1,16], index: 9, kind: output, shape index: {}]  }
   0x1   :  { %1824 = vmatprep.subr.mxu1 %v2186_v0  ;;  %v2243_v1 = vld [vmem:[%s2744_s3 + $0x38] sm:$0xff]  ;;  %v2248_v2 = vld [vmem:[%s2744_s3 + $0x30] sm:$0xff]  ;;  %133 = vmatprep.mubr.f32.mxu0 %v2186_v0  ;;  %v1644_v3 = vld.sshfl [vmem:[%s2745_s2] sm:$0x33 pattern:$0x76325410]  ;;  %v38_v22 = vlaneseq }
   0x2   :  { %1825 = vmatpush3.msra.mxu1 %v2243_v1  ;;  %1840 = vmatprep.mubr.msk.f32.mxu1 %vm2187_vm1, %v2186_v0  ;;  %v2261_v4 = vld [vmem:[%s2744_s3 + $0x28] sm:$0xff]  ;;  %v56_v5 = vcombine.high %v1644_v3, %v1644_v3  ;;  %v33_v6 = vld [vmem:[%s2746_s0] sm:$0xff]  ;;  %v2279_v8 = vld [vmem:[%s2747_s4 + $0x38] sm:$0xff]  ;;  %vm164_vm3 = vcmask 523264   ;;  %vm1549_vm4 = vcmask 1043456   ;;  %vm1551_vm5 = vcmask 1045504  }
   0x3   :  { %1826 = vmatprep.subr.mxu1 %v2186_v0  ;;  %v2271_v7 = vld [vmem:[%s2744_s3 + $0x20] sm:$0xff]  ;;  %v2285_v9 = vld [vmem:[%s2744_s3 + $0x18] sm:$0xff]  ;;  %v2293_v10 = vld [vmem:[%s2747_s4 + $0x30] sm:$0xff]  ;;  %v39_v23 = vshrl.u32 %v38_v22, 7  ;;  %vm1638_vm6 = vcmask 122880  }
   0x4   :  { %1827 = vmatpush3.msra.mxu1 %v2248_v2  ;;  %1645 = vmatprep.subr.msk.mxu0 %vm64_vm0, %v56_v5  ;;  %v2299_v11 = vld [vmem:[%s2744_s3 + $0x10] sm:$0xff]  ;;  %v2307_v12 = vld [vmem:[%s2747_s4 + $0x28] sm:$0xff]  ;;  %v2321_v14 = vld [vmem:[%s2747_s4 + $0x20] sm:$0xff] }
   0x5   :  { %1828 = vmatprep.subr.mxu1 %v2186_v0  ;;  %1646 = vmatpush1.msk.msra.mxu0 %vm64_vm0, %v1644_v3  ;;  %v2313_v13 = vld [vmem:[%s2744_s3 + $0x8] sm:$0xff]  ;;  %v2327_v15 = vld [vmem:[%s2744_s3] sm:$0xff]  ;;  %v2340_v17 = vld [vmem:[%s2747_s4 + $0x18] sm:$0xff]  ;;  %v40_v24 = vsub.s32 0, %v39_v23  ;;  %v44_v29 = vsub.s32 1, %v39_v23 }
   0x6   :  { %1829 = vmatpush3.msra.mxu1 %v2261_v4  ;;  %1647 = vmatmul.mubr.msk.f32.vlgmr.msra.gmra.mxu0 %vm57_vm2, %v33_v6  ;;  %v2334_v16 = vld [vmem:[%s2748_s1] sm:$0x3]  ;;  %v2349_v18 = vld [vmem:[%s2747_s4 + $0x10] sm:$0xff]  ;;  %v34_v19 = vld [vmem:[%s2746_s0 + $0x8] sm:$0xff] }
   0x7   :  { %1830 = vmatprep.subr.mxu1 %v2186_v0  ;;  %1843 = vmatprep.subr.mxu0 %v2186_v0  ;;  %v2362_v20 = vld [vmem:[%s2747_s4 + $0x8] sm:$0xff]  ;;  %v2371_v21 = vld [vmem:[%s2747_s4] sm:$0xff] }
   0x8   :  { %1831 = vmatpush3.msra.mxu1 %v2271_v7  ;;  %1844 = vmatpush3.msra.mxu0 %v2279_v8  ;;  %v36_v25 = vld [vmem:[%s2749_s5] sm:$0x3] }
   0x9   :  { %1832 = vmatprep.subr.mxu1 %v2186_v0  ;;  %1845 = vmatprep.subr.mxu0 %v2186_v0  ;;  %v41_v26 = vrot.slane %v36_v25, %v40_v24  ;;  %v45_v36 = vrot.slane %v36_v25, %v44_v29  ;;  %v2430_v44 = vld [vmem:[%s2750_s6] ss:$0 sm:$0xff] }
   0xa   :  { %1833 = vmatpush3.msra.mxu1 %v2285_v9  ;;  %1846 = vmatpush3.msra.mxu0 %v2293_v10 }
   0xb   :  { %1834 = vmatprep.subr.mxu1 %v2186_v0  ;;  %1847 = vmatprep.subr.mxu0 %v2186_v0 }
   0xc   :  { %1835 = vmatpush3.msra.mxu1 %v2299_v11  ;;  %1848 = vmatpush3.msra.mxu0 %v2307_v12 }
   0xd   :  { %1836 = vmatprep.subr.mxu1 %v2186_v0  ;;  %1849 = vmatprep.subr.mxu0 %v2186_v0 }
   0xe   :  { %1837 = vmatpush3.msra.mxu1 %v2313_v13  ;;  %1850 = vmatpush3.msra.mxu0 %v2321_v14 }
   0xf   :  { %1838 = vmatprep.subr.mxu1 %v2186_v0  ;;  %1851 = vmatprep.subr.mxu0 %v2186_v0 }
  0x10   :  { %1839 = vmatpush3.msra.mxu1 %v2327_v15  ;;  %1852 = vmatpush3.msra.mxu0 %v2340_v17 }
  0x11   :  { %1841 = vmatmul.mubr.msk.f32.vlgmr.msra.gmra.mxu1 %vm164_vm3, %v2334_v16  ;;  %1853 = vmatprep.subr.mxu0 %v2186_v0 }
  0x12   :  { %139 = vmatprep.mubr.f32.mxu0 %v2186_v0  ;;  %1854 = vmatpush3.msra.mxu0 %v2349_v18 }
  0x13   :  { %1862 = vmatprep.subr.mxu1 %v2186_v0  ;;  %1648 = vmatmul.mubr.msk.f32.gmra.mxu0 %vm57_vm2, %v34_v19 }
  0x14   :  { %1855 = vmatprep.subr.mxu0 %v2186_v0  ;;  %1859 = vmatprep.mubr.msk.f32.mxu0 %vm2187_vm1, %v2186_v0 }
  0x15   :  { %1856 = vmatpush3.msra.mxu0 %v2362_v20  ;;  %1863 = vmatpush3.msra.mxu1 %v2243_v1 }
  0x16   :  { %1857 = vmatprep.subr.mxu0 %v2186_v0  ;;  %1864 = vmatprep.subr.mxu1 %v2186_v0 }
  0x17   :  { %1858 = vmatpush3.msra.mxu0 %v2371_v21  ;;  %1865 = vmatpush3.msra.mxu1 %v2248_v2 }
  0x18   :  { %1860 = vmatmul.mubr.msk.f32.vlgmr.msra.gmra.mxu0 %vm164_vm3, %v2334_v16  ;;  %1881 = vmatprep.subr.mxu0 %v2186_v0 }
  0x19   :  { %1882 = vmatpush3.msra.mxu0 %v2279_v8  ;;  %1866 = vmatprep.subr.mxu1 %v2186_v0 }
  0x1a   :  { %1883 = vmatprep.subr.mxu0 %v2186_v0  ;;  %1867 = vmatpush3.msra.mxu1 %v2261_v4 }
  0x1b   :  { %1884 = vmatpush3.msra.mxu0 %v2293_v10  ;;  %1868 = vmatprep.subr.mxu1 %v2186_v0 }
  0x1c   :  { %1885 = vmatprep.subr.mxu0 %v2186_v0  ;;  %1869 = vmatpush3.msra.mxu1 %v2271_v7 }
  0x1d   :  { %1886 = vmatpush3.msra.mxu0 %v2307_v12  ;;  %1870 = vmatprep.subr.mxu1 %v2186_v0 }
  0x1e   :  { %1887 = vmatprep.subr.mxu0 %v2186_v0  ;;  %1871 = vmatpush3.msra.mxu1 %v2285_v9 }
  0x1f   :  { %1888 = vmatpush3.msra.mxu0 %v2321_v14  ;;  %1872 = vmatprep.subr.mxu1 %v2186_v0 }
  0x20   :  { %1889 = vmatprep.subr.mxu0 %v2186_v0  ;;  %1873 = vmatpush3.msra.mxu1 %v2299_v11 }
  0x21   :  { %1890 = vmatpush3.msra.mxu0 %v2340_v17  ;;  %1874 = vmatprep.subr.mxu1 %v2186_v0 }
  0x22   :  { %1891 = vmatprep.subr.mxu0 %v2186_v0  ;;  %1875 = vmatpush3.msra.mxu1 %v2313_v13 }
  0x23   :  { %1892 = vmatpush3.msra.mxu0 %v2349_v18  ;;  %1876 = vmatprep.subr.mxu1 %v2186_v0 }
  0x24   :  { %1893 = vmatprep.subr.mxu0 %v2186_v0  ;;  %1877 = vmatpush3.msra.mxu1 %v2327_v15 }
  0x25   :  { %1894 = vmatpush3.msra.mxu0 %v2362_v20  ;;  %1878 = vmatprep.mubr.msk.f32.mxu1 %vm2187_vm1, %v2186_v0 }
  0x26   :  { %1895 = vmatprep.subr.mxu0 %v2186_v0  ;;  %1897 = vmatprep.mubr.msk.f32.mxu0 %vm2187_vm1, %v2186_v0 }
  0x27   :  { %1896 = vmatpush3.msra.mxu0 %v2371_v21  ;;  %1900 = vmatprep.subr.mxu1 %v2186_v0 }
  0x28   :  { %1919 = vmatprep.subr.mxu0 %v2186_v0 }
  0xc6   :  { %v135_v27 = vpop.f32.mrf.mxu0 }
  0xc7   :  { %v2420_v28 = vadd.f32 %v135_v27, %v41_v26 }
  0xc8   :  { %v137_v31 = vpop.f32.mrf.mxu0 }
  0xc9   :  { %v2434_v48 = vadd.f32 %v137_v31, %v45_v36 }
  0xd1   :  { %v234_v30 = vpop.f32.mrf.mxu1 }
  0xd2   :  { %v314_v32 = vadd.f32 %v234_v30, %v2420_v28 }
  0xd3   :  { %v1842_v33 = vpop.f32.mrf.mxu1  ;;  %v141_v35 = vpop.f32.mrf.mxu0 }
  0xd4   :  { %v1652_v34 = vmul.f32 -1.442695, %v314_v32  ;;  %v2423_v37 = vadd.f32 %v141_v35, %v41_v26 }
  0xd5   :  { %v143_v38 = vpop.f32.mrf.mxu0 }
  0xd6   :  { %2138 = vpow2.f32 %v1652_v34  ;;  %v2425_v39 = vadd.f32 %v143_v38, %v45_v36 }
  0xd8   :  { %v310_v40 = vpop.f32.mrf.mxu0 }
  0xd9   :  { %v311_v45 = vadd.f32 %v2430_v44, %v310_v40 }
  0xda   :  { %v1861_v41 = vpop.f32.mrf.mxu0 }
  0xe3   :  { %v2139_v42 = vpop.eup %2138 }
  0xe4   :  { %v318_v43 = vadd.f32 1.0, %v2139_v42 }
  0xe6   :  { %2140 = vrcp.f32 %v318_v43 }
  0xf3   :  { %v2141_v46 = vpop.eup %2140 }
  0xf4   :  { %v323_v47 = vmul.f32 %v2141_v46, %v311_v45  ;;  %321 = vrot.lane.b32.xlu0 %v2141_v46, %s2188_s25 }
  0xf6   :  { %v324_v49 = vadd.f32 %v323_v47, %v2434_v48 }
  0xf8   :  { %2142 = vtanh.f32 %v324_v49 }
 0x105   :  { %v2143_v50 = vpop.eup %2142 }
 0x106   :  { %v326_v51 = vsub.f32 %v2334_v16, %v2143_v50 }
 0x166   :  { %v322_v52 = vpop.permute.xlu0 %321 }
 0x167   :  { %v327_v53 = vmul.f32 %v326_v51, %v322_v52 }
 0x169   :  { %v2438_v54 = vadd.f32 %v2143_v50, %v327_v53 }
 0x16b   :  { %1879 = vmatmul.mubr.msk.f32.vlgmr.msra.gmra.mxu1 %vm164_vm3, %v2438_v54  ;;  %1898 = vmatmul.mubr.msk.f32.vlgmr.msra.gmra.mxu0 %vm164_vm3, %v2438_v54 }
 0x16c   :  { %1901 = vmatpush3.msra.mxu1 %v2243_v1  ;;  %1920 = vmatpush3.msra.mxu0 %v2279_v8 }
 0x16d   :  { %1902 = vmatprep.subr.mxu1 %v2186_v0  ;;  %1921 = vmatprep.subr.mxu0 %v2186_v0 }
 0x16e   :  { %1903 = vmatpush3.msra.mxu1 %v2248_v2  ;;  %1922 = vmatpush3.msra.mxu0 %v2293_v10 }
 0x16f   :  { %1904 = vmatprep.subr.mxu1 %v2186_v0  ;;  %1923 = vmatprep.subr.mxu0 %v2186_v0 }
 0x170   :  { %1905 = vmatpush3.msra.mxu1 %v2261_v4  ;;  %1924 = vmatpush3.msra.mxu0 %v2307_v12 }
 0x171   :  { %1906 = vmatprep.subr.mxu1 %v2186_v0  ;;  %1925 = vmatprep.subr.mxu0 %v2186_v0 }
 0x172   :  { %1907 = vmatpush3.msra.mxu1 %v2271_v7  ;;  %1926 = vmatpush3.msra.mxu0 %v2321_v14 }
 0x173   :  { %1908 = vmatprep.subr.mxu1 %v2186_v0  ;;  %1927 = vmatprep.subr.mxu0 %v2186_v0 }
 0x174   :  { %1909 = vmatpush3.msra.mxu1 %v2285_v9  ;;  %1928 = vmatpush3.msra.mxu0 %v2340_v17 }
 0x175   :  { %1910 = vmatprep.subr.mxu1 %v2186_v0  ;;  %1929 = vmatprep.subr.mxu0 %v2186_v0 }
 0x176   :  { %1911 = vmatpush3.msra.mxu1 %v2299_v11  ;;  %1930 = vmatpush3.msra.mxu0 %v2349_v18 }
 0x177   :  { %1912 = vmatprep.subr.mxu1 %v2186_v0  ;;  %1931 = vmatprep.subr.mxu0 %v2186_v0 }
 0x178   :  { %1913 = vmatpush3.msra.mxu1 %v2313_v13  ;;  %1932 = vmatpush3.msra.mxu0 %v2362_v20 }
 0x179   :  { %1914 = vmatprep.subr.mxu1 %v2186_v0  ;;  %1933 = vmatprep.subr.mxu0 %v2186_v0 }
 0x17a   :  { %1915 = vmatpush3.msra.mxu1 %v2327_v15  ;;  %1916 = vmatprep.mubr.msk.f32.mxu1 %vm2187_vm1, %v2186_v0 }
 0x17b   :  { %1934 = vmatpush3.msra.mxu0 %v2371_v21  ;;  %1935 = vmatprep.mubr.msk.f32.mxu0 %vm2187_vm1, %v2186_v0 }
 0x17c   :  { %1938 = vmatprep.subr.mxu1 %v2186_v0  ;;  %1957 = vmatprep.subr.mxu0 %v2186_v0 }
 0x22b   :  { %v398_v55 = vpop.f32.mrf.mxu1  ;;  %v468_v56 = vpop.f32.mrf.mxu0 }
 0x22c   :  { %v473_v57 = vrot.slane %v398_v55, 6  ;;  %v469_v3 = vadd.f32 %v2430_v44, %v468_v56 }
 0x22d   :  { %v1880_v58 = vpop.f32.mrf.mxu1  ;;  %v1899_v59 = vpop.f32.mrf.mxu0 }
 0x22e   :  { %v475_v60 = vadd.f32 %v473_v57, %v2420_v28  ;;  %v488_v5 = vrot.slane %v469_v3, 6 }
 0x230   :  { %v1655_v61 = vmul.f32 -1.442695, %v475_v60 }
 0x232   :  { %2144 = vpow2.f32 %v1655_v61 }
 0x23f   :  { %v2145_v62 = vpop.eup %2144 }
 0x240   :  { %v479_v63 = vadd.f32 1.0, %v2145_v62 }
 0x242   :  { %2146 = vrcp.f32 %v479_v63 }
 0x24f   :  { %v2147_v6 = vpop.eup %2146 }
 0x250   :  { %v490_v16 = vmul.f32 %v2147_v6, %v488_v5  ;;  %v483_v19 = vrot.slane %v2147_v6, 2 }
 0x252   :  { %485 = vrot.lane.b32.xlu0 %v483_v19, %s2188_s25  ;;  %v491_v22 = vadd.f32 %v490_v16, %v2434_v48 }
 0x254   :  { %2148 = vtanh.f32 %v491_v22 }
 0x261   :  { %v2149_v23 = vpop.eup %2148 }
 0x262   :  { %v494_v24 = vrot.slane %v2149_v23, 2 }
 0x264   :  { %v496_v25 = vsub.f32 %v2438_v54, %v494_v24 }
 0x2c4   :  { %v486_v26 = vpop.permute.xlu0 %485 }
 0x2c5   :  { %v497_v27 = vmul.f32 %v496_v25, %v486_v26 }
 0x2c7   :  { %v499_v29 = vrot.slane %v497_v27, 6 }
 0x2c9   :  { %v2485_v30 = vadd.f32 %v2149_v23, %v499_v29 }
 0x2cb   :  { %v503_v31 = vrot.slane %v2485_v30, 2 }
 0x2cd   :  { %1917 = vmatmul.mubr.msk.f32.vlgmr.msra.gmra.mxu1 %vm164_vm3, %v503_v31  ;;  %1936 = vmatmul.mubr.msk.f32.vlgmr.msra.gmra.mxu0 %vm164_vm3, %v503_v31 }
 0x2ce   :  { %1939 = vmatpush3.msra.mxu1 %v2243_v1  ;;  %1958 = vmatpush3.msra.mxu0 %v2279_v8 }
 0x2cf   :  { %1940 = vmatprep.subr.mxu1 %v2186_v0  ;;  %1959 = vmatprep.subr.mxu0 %v2186_v0 }
 0x2d0   :  { %1941 = vmatpush3.msra.mxu1 %v2248_v2  ;;  %1960 = vmatpush3.msra.mxu0 %v2293_v10 }
 0x2d1   :  { %1942 = vmatprep.subr.mxu1 %v2186_v0  ;;  %1961 = vmatprep.subr.mxu0 %v2186_v0 }
 0x2d2   :  { %1943 = vmatpush3.msra.mxu1 %v2261_v4  ;;  %1962 = vmatpush3.msra.mxu0 %v2307_v12 }
 0x2d3   :  { %1944 = vmatprep.subr.mxu1 %v2186_v0  ;;  %1963 = vmatprep.subr.mxu0 %v2186_v0 }
 0x2d4   :  { %1945 = vmatpush3.msra.mxu1 %v2271_v7  ;;  %1964 = vmatpush3.msra.mxu0 %v2321_v14 }
 0x2d5   :  { %1946 = vmatprep.subr.mxu1 %v2186_v0  ;;  %1965 = vmatprep.subr.mxu0 %v2186_v0 }
 0x2d6   :  { %1947 = vmatpush3.msra.mxu1 %v2285_v9  ;;  %1966 = vmatpush3.msra.mxu0 %v2340_v17 }
 0x2d7   :  { %1948 = vmatprep.subr.mxu1 %v2186_v0  ;;  %1967 = vmatprep.subr.mxu0 %v2186_v0 }
 0x2d8   :  { %1949 = vmatpush3.msra.mxu1 %v2299_v11  ;;  %1968 = vmatpush3.msra.mxu0 %v2349_v18 }
 0x2d9   :  { %1950 = vmatprep.subr.mxu1 %v2186_v0  ;;  %1969 = vmatprep.subr.mxu0 %v2186_v0 }
 0x2da   :  { %1951 = vmatpush3.msra.mxu1 %v2313_v13  ;;  %1970 = vmatpush3.msra.mxu0 %v2362_v20 }
 0x2db   :  { %1952 = vmatprep.subr.mxu1 %v2186_v0  ;;  %1971 = vmatprep.subr.mxu0 %v2186_v0 }
 0x2dc   :  { %1953 = vmatpush3.msra.mxu1 %v2327_v15  ;;  %1954 = vmatprep.mubr.msk.f32.mxu1 %vm2187_vm1, %v2186_v0 }
 0x2dd   :  { %1972 = vmatpush3.msra.mxu0 %v2371_v21  ;;  %1973 = vmatprep.mubr.msk.f32.mxu0 %vm2187_vm1, %v2186_v0 }
 0x2de   :  { %1976 = vmatprep.subr.mxu1 %v2186_v0  ;;  %1995 = vmatprep.subr.mxu0 %v2186_v0 }
 0x38d   :  { %v572_v32 = vpop.f32.mrf.mxu1  ;;  %v642_v33 = vpop.f32.mrf.mxu0 }
 0x38e   :  { %v647_v34 = vrot.slane %v572_v32, 4  ;;  %v643_v43 = vadd.f32 %v2430_v44, %v642_v33 }
 0x38f   :  { %v1918_v35 = vpop.f32.mrf.mxu1  ;;  %v1937_v36 = vpop.f32.mrf.mxu0 }
 0x390   :  { %v649_v38 = vadd.f32 %v647_v34, %v2420_v28  ;;  %v662_v45 = vrot.slane %v643_v43, 4 }
 0x392   :  { %v1658_v40 = vmul.f32 -1.442695, %v649_v38 }
 0x394   :  { %2150 = vpow2.f32 %v1658_v40 }
 0x3a1   :  { %v2151_v41 = vpop.eup %2150 }
 0x3a2   :  { %v653_v42 = vadd.f32 1.0, %v2151_v41 }
 0x3a4   :  { %2152 = vrcp.f32 %v653_v42 }
 0x3b1   :  { %v2153_v46 = vpop.eup %2152 }
 0x3b2   :  { %v664_v47 = vmul.f32 %v2153_v46, %v662_v45  ;;  %v657_v49 = vrot.slane %v2153_v46, 4 }
 0x3b4   :  { %659 = vrot.lane.b32.xlu1 %v657_v49, %s2188_s25  ;;  %v665_v50 = vadd.f32 %v664_v47, %v2434_v48 }
 0x3b6   :  { %2154 = vtanh.f32 %v665_v50 }
 0x3c3   :  { %v2155_v51 = vpop.eup %2154 }
 0x3c4   :  { %v668_v52 = vrot.slane %v2155_v51, 2 }
 0x3c6   :  { %v670_v53 = vsub.f32 %v2485_v30, %v668_v52 }
 0x3c8   :  { %v672_v55 = vrot.slane %v670_v53, 2 }
 0x426   :  { %v660_v56 = vpop.permute.xlu1 %659 }
 0x427   :  { %v674_v57 = vmul.f32 %v672_v55, %v660_v56 }
 0x429   :  { %v676_v58 = vrot.slane %v674_v57, 4 }
 0x42b   :  { %v2531_v59 = vadd.f32 %v2155_v51, %v676_v58 }
 0x42d   :  { %v680_v60 = vrot.slane %v2531_v59, 4 }
 0x42f   :  { %1955 = vmatmul.mubr.msk.f32.vlgmr.msra.gmra.mxu1 %vm164_vm3, %v680_v60  ;;  %1974 = vmatmul.mubr.msk.f32.vlgmr.msra.gmra.mxu0 %vm164_vm3, %v680_v60 }
 0x430   :  { %1977 = vmatpush3.msra.mxu1 %v2243_v1  ;;  %1996 = vmatpush3.msra.mxu0 %v2279_v8 }
 0x431   :  { %1978 = vmatprep.subr.mxu1 %v2186_v0  ;;  %1997 = vmatprep.subr.mxu0 %v2186_v0 }
 0x432   :  { %1979 = vmatpush3.msra.mxu1 %v2248_v2  ;;  %1998 = vmatpush3.msra.mxu0 %v2293_v10 }
 0x433   :  { %1980 = vmatprep.subr.mxu1 %v2186_v0  ;;  %1999 = vmatprep.subr.mxu0 %v2186_v0 }
 0x434   :  { %1981 = vmatpush3.msra.mxu1 %v2261_v4  ;;  %2000 = vmatpush3.msra.mxu0 %v2307_v12 }
 0x435   :  { %1982 = vmatprep.subr.mxu1 %v2186_v0  ;;  %2001 = vmatprep.subr.mxu0 %v2186_v0 }
 0x436   :  { %1983 = vmatpush3.msra.mxu1 %v2271_v7  ;;  %2002 = vmatpush3.msra.mxu0 %v2321_v14 }
 0x437   :  { %1984 = vmatprep.subr.mxu1 %v2186_v0  ;;  %2003 = vmatprep.subr.mxu0 %v2186_v0 }
 0x438   :  { %1985 = vmatpush3.msra.mxu1 %v2285_v9  ;;  %2004 = vmatpush3.msra.mxu0 %v2340_v17 }
 0x439   :  { %1986 = vmatprep.subr.mxu1 %v2186_v0  ;;  %2005 = vmatprep.subr.mxu0 %v2186_v0 }
 0x43a   :  { %1987 = vmatpush3.msra.mxu1 %v2299_v11  ;;  %2006 = vmatpush3.msra.mxu0 %v2349_v18 }
 0x43b   :  { %1988 = vmatprep.subr.mxu1 %v2186_v0  ;;  %2007 = vmatprep.subr.mxu0 %v2186_v0 }
 0x43c   :  { %1989 = vmatpush3.msra.mxu1 %v2313_v13  ;;  %2008 = vmatpush3.msra.mxu0 %v2362_v20 }
 0x43d   :  { %1990 = vmatprep.subr.mxu1 %v2186_v0  ;;  %2009 = vmatprep.subr.mxu0 %v2186_v0 }
 0x43e   :  { %1991 = vmatpush3.msra.mxu1 %v2327_v15  ;;  %1992 = vmatprep.mubr.msk.f32.mxu1 %vm2187_vm1, %v2186_v0 }
 0x43f   :  { %2010 = vmatpush3.msra.mxu0 %v2371_v21  ;;  %2011 = vmatprep.mubr.msk.f32.mxu0 %vm2187_vm1, %v2186_v0 }
 0x440   :  { %2014 = vmatprep.subr.mxu1 %v2186_v0  ;;  %2033 = vmatprep.subr.mxu0 %v2186_v0 }
 0x4ef   :  { %v749_v61 = vpop.f32.mrf.mxu1  ;;  %v819_v62 = vpop.f32.mrf.mxu0 }
 0x4f0   :  { %v824_v63 = vrot.slane %v749_v61, 2  ;;  %v820_v23 = vadd.f32 %v2430_v44, %v819_v62 }
 0x4f1   :  { %v1956_v3 = vpop.f32.mrf.mxu1  ;;  %v1975_v5 = vpop.f32.mrf.mxu0 }
 0x4f2   :  { %v826_v6 = vadd.f32 %v824_v63, %v2420_v28  ;;  %v839_v24 = vrot.slane %v820_v23, 2 }
 0x4f4   :  { %v1661_v16 = vmul.f32 -1.442695, %v826_v6 }
 0x4f6   :  { %2156 = vpow2.f32 %v1661_v16 }
 0x503   :  { %v2157_v19 = vpop.eup %2156 }
 0x504   :  { %v830_v22 = vadd.f32 1.0, %v2157_v19 }
 0x506   :  { %2158 = vrcp.f32 %v830_v22 }
 0x513   :  { %v2159_v25 = vpop.eup %2158 }
 0x514   :  { %v841_v26 = vmul.f32 %v2159_v25, %v839_v24  ;;  %v834_v27 = vrot.slane %v2159_v25, 6 }
 0x516   :  { %836 = vrot.lane.b32.xlu1 %v834_v27, %s2188_s25  ;;  %v842_v29 = vadd.f32 %v841_v26, %v2434_v48 }
 0x518   :  { %2160 = vtanh.f32 %v842_v29 }
 0x525   :  { %v2161_v31 = vpop.eup %2160 }
 0x526   :  { %v845_v32 = vrot.slane %v2161_v31, 2 }
 0x528   :  { %v847_v28 = vsub.f32 %v2531_v59, %v845_v32 }
 0x52a   :  { %v849_v33 = vrot.slane %v847_v28, 4 }
 0x588   :  { %v837_v34 = vpop.permute.xlu1 %836 }
 0x589   :  { %v851_v35 = vmul.f32 %v849_v33, %v837_v34 }
 0x58b   :  { %v853_v36 = vrot.slane %v851_v35, 2 }
 0x58d   :  { %v2577_v38 = vadd.f32 %v2161_v31, %v853_v36 }
 0x58f   :  { %v857_v40 = vrot.slane %v2577_v38, 6 }
 0x591   :  { %1993 = vmatmul.mubr.msk.f32.vlgmr.msra.gmra.mxu1 %vm164_vm3, %v857_v40  ;;  %2012 = vmatmul.mubr.msk.f32.vlgmr.msra.gmra.mxu0 %vm164_vm3, %v857_v40 }
 0x592   :  { %2015 = vmatpush3.msra.mxu1 %v2243_v1  ;;  %2034 = vmatpush3.msra.mxu0 %v2279_v8 }
 0x593   :  { %2016 = vmatprep.subr.mxu1 %v2186_v0  ;;  %2035 = vmatprep.subr.mxu0 %v2186_v0 }
 0x594   :  { %2017 = vmatpush3.msra.mxu1 %v2248_v2  ;;  %2036 = vmatpush3.msra.mxu0 %v2293_v10 }
 0x595   :  { %2018 = vmatprep.subr.mxu1 %v2186_v0  ;;  %2037 = vmatprep.subr.mxu0 %v2186_v0 }
 0x596   :  { %2019 = vmatpush3.msra.mxu1 %v2261_v4  ;;  %2038 = vmatpush3.msra.mxu0 %v2307_v12 }
 0x597   :  { %2020 = vmatprep.subr.mxu1 %v2186_v0  ;;  %2039 = vmatprep.subr.mxu0 %v2186_v0 }
 0x598   :  { %2021 = vmatpush3.msra.mxu1 %v2271_v7  ;;  %2040 = vmatpush3.msra.mxu0 %v2321_v14 }
 0x599   :  { %2022 = vmatprep.subr.mxu1 %v2186_v0  ;;  %2041 = vmatprep.subr.mxu0 %v2186_v0 }
 0x59a   :  { %2023 = vmatpush3.msra.mxu1 %v2285_v9  ;;  %2042 = vmatpush3.msra.mxu0 %v2340_v17 }
 0x59b   :  { %2024 = vmatprep.subr.mxu1 %v2186_v0  ;;  %2043 = vmatprep.subr.mxu0 %v2186_v0 }
 0x59c   :  { %2025 = vmatpush3.msra.mxu1 %v2299_v11  ;;  %2044 = vmatpush3.msra.mxu0 %v2349_v18 }
 0x59d   :  { %2026 = vmatprep.subr.mxu1 %v2186_v0  ;;  %2045 = vmatprep.subr.mxu0 %v2186_v0 }
 0x59e   :  { %2027 = vmatpush3.msra.mxu1 %v2313_v13  ;;  %2046 = vmatpush3.msra.mxu0 %v2362_v20 }
 0x59f   :  { %2028 = vmatprep.subr.mxu1 %v2186_v0  ;;  %2047 = vmatprep.subr.mxu0 %v2186_v0 }
 0x5a0   :  { %2029 = vmatpush3.msra.mxu1 %v2327_v15  ;;  %2030 = vmatprep.mubr.msk.f32.mxu1 %vm2187_vm1, %v2186_v0 }
 0x5a1   :  { %2048 = vmatpush3.msra.mxu0 %v2371_v21  ;;  %2049 = vmatprep.mubr.msk.f32.mxu0 %vm2187_vm1, %v2186_v0 }
 0x5a2   :  { %2052 = vmatprep.subr.mxu1 %v2186_v0  ;;  %2071 = vmatprep.subr.mxu0 %v2186_v0 }
 0x651   :  { %v926_v48 = vpop.f32.mrf.mxu1  ;;  %v996_v41 = vpop.f32.mrf.mxu0 }
 0x652   :  { %v1000_v42 = vadd.f32 %v926_v48, %v2423_v37  ;;  %v997_v50 = vadd.f32 %v2430_v44, %v996_v41 }
 0x653   :  { %v1994_v43 = vpop.f32.mrf.mxu1  ;;  %v2013_v45 = vpop.f32.mrf.mxu0 }
 0x654   :  { %v1664_v46 = vmul.f32 -1.442695, %v1000_v42 }
 0x656   :  { %2162 = vpow2.f32 %v1664_v46 }
 0x663   :  { %v2163_v47 = vpop.eup %2162 }
 0x664   :  { %v1004_v49 = vadd.f32 1.0, %v2163_v47 }
 0x666   :  { %2164 = vrcp.f32 %v1004_v49 }
 0x673   :  { %v2165_v51 = vpop.eup %2164 }
 0x674   :  { %v1009_v52 = vmul.f32 %v2165_v51, %v997_v50  ;;  %1007 = vrot.lane.b32.xlu0 %v2165_v51, %s2188_s25 }
 0x676   :  { %v1010_v53 = vadd.f32 %v1009_v52, %v2425_v39 }
 0x678   :  { %2166 = vtanh.f32 %v1010_v53 }
 0x685   :  { %v2167_v55 = vpop.eup %2166 }
 0x686   :  { %v1013_v56 = vrot.slane %v2167_v55, 2 }
 0x688   :  { %v1015_v57 = vsub.f32 %v2577_v38, %v1013_v56 }
 0x68a   :  { %v1017_v58 = vrot.slane %v1015_v57, 6 }
 0x6e6   :  { %v1008_v60 = vpop.permute.xlu0 %1007 }
 0x6e7   :  { %v1019_v61 = vmul.f32 %v1017_v58, %v1008_v60 }
 0x6e9   :  { %v2623_v62 = vadd.f32 %v2167_v55, %v1019_v61 }
 0x6eb   :  { %2031 = vmatmul.mubr.msk.f32.vlgmr.msra.gmra.mxu1 %vm164_vm3, %v2623_v62  ;;  %2050 = vmatmul.mubr.msk.f32.vlgmr.msra.gmra.mxu0 %vm164_vm3, %v2623_v62 }
 0x6ec   :  { %2053 = vmatpush3.msra.mxu1 %v2243_v1  ;;  %2072 = vmatpush3.msra.mxu0 %v2279_v8 }
 0x6ed   :  { %2054 = vmatprep.subr.mxu1 %v2186_v0  ;;  %2073 = vmatprep.subr.mxu0 %v2186_v0 }
 0x6ee   :  { %2055 = vmatpush3.msra.mxu1 %v2248_v2  ;;  %2074 = vmatpush3.msra.mxu0 %v2293_v10 }
 0x6ef   :  { %2056 = vmatprep.subr.mxu1 %v2186_v0  ;;  %2075 = vmatprep.subr.mxu0 %v2186_v0 }
 0x6f0   :  { %2057 = vmatpush3.msra.mxu1 %v2261_v4  ;;  %2076 = vmatpush3.msra.mxu0 %v2307_v12 }
 0x6f1   :  { %2058 = vmatprep.subr.mxu1 %v2186_v0  ;;  %2077 = vmatprep.subr.mxu0 %v2186_v0 }
 0x6f2   :  { %2059 = vmatpush3.msra.mxu1 %v2271_v7  ;;  %2078 = vmatpush3.msra.mxu0 %v2321_v14 }
 0x6f3   :  { %2060 = vmatprep.subr.mxu1 %v2186_v0  ;;  %2079 = vmatprep.subr.mxu0 %v2186_v0 }
 0x6f4   :  { %2061 = vmatpush3.msra.mxu1 %v2285_v9  ;;  %2080 = vmatpush3.msra.mxu0 %v2340_v17 }
 0x6f5   :  { %2062 = vmatprep.subr.mxu1 %v2186_v0  ;;  %2081 = vmatprep.subr.mxu0 %v2186_v0 }
 0x6f6   :  { %2063 = vmatpush3.msra.mxu1 %v2299_v11  ;;  %2082 = vmatpush3.msra.mxu0 %v2349_v18 }
 0x6f7   :  { %2064 = vmatprep.subr.mxu1 %v2186_v0  ;;  %2083 = vmatprep.subr.mxu0 %v2186_v0 }
 0x6f8   :  { %2065 = vmatpush3.msra.mxu1 %v2313_v13  ;;  %2084 = vmatpush3.msra.mxu0 %v2362_v20 }
 0x6f9   :  { %2066 = vmatprep.subr.mxu1 %v2186_v0  ;;  %2085 = vmatprep.subr.mxu0 %v2186_v0 }
 0x6fa   :  { %2067 = vmatpush3.msra.mxu1 %v2327_v15  ;;  %2068 = vmatprep.mubr.msk.f32.mxu1 %vm2187_vm1, %v2186_v0 }
 0x6fb   :  { %2086 = vmatpush3.msra.mxu0 %v2371_v21  ;;  %2087 = vmatprep.mubr.msk.f32.mxu0 %vm2187_vm1, %v2186_v0 }
 0x6fc   :  { %2090 = vmatprep.subr.mxu1 %v2186_v0  ;;  %2109 = vmatprep.subr.mxu0 %v2186_v0 }
 0x7ab   :  { %v1090_v63 = vpop.f32.mrf.mxu1  ;;  %v1160_v3 = vpop.f32.mrf.mxu0 }
 0x7ac   :  { %v1165_v5 = vrot.slane %v1090_v63, 6  ;;  %v1161_v25 = vadd.f32 %v2430_v44, %v1160_v3 }
 0x7ad   :  { %v2032_v6 = vpop.f32.mrf.mxu1  ;;  %v2051_v16 = vpop.f32.mrf.mxu0 }
 0x7ae   :  { %v1167_v19 = vadd.f32 %v1165_v5, %v2423_v37  ;;  %v1180_v26 = vrot.slane %v1161_v25, 6 }
 0x7b0   :  { %v1667_v22 = vmul.f32 -1.442695, %v1167_v19 }
 0x7b2   :  { %2168 = vpow2.f32 %v1667_v22 }
 0x7bf   :  { %v2169_v23 = vpop.eup %2168 }
 0x7c0   :  { %v1171_v24 = vadd.f32 1.0, %v2169_v23 }
 0x7c2   :  { %2170 = vrcp.f32 %v1171_v24 }
 0x7cf   :  { %v2171_v27 = vpop.eup %2170 }
 0x7d0   :  { %v1182_v29 = vmul.f32 %v2171_v27, %v1180_v26  ;;  %v1175_v31 = vrot.slane %v2171_v27, 2 }
 0x7d2   :  { %1177 = vrot.lane.b32.xlu1 %v1175_v31, %s2188_s25  ;;  %v1183_v32 = vadd.f32 %v1182_v29, %v2425_v39 }
 0x7d4   :  { %2172 = vtanh.f32 %v1183_v32 }
 0x7e1   :  { %v2173_v28 = vpop.eup %2172 }
 0x7e2   :  { %v1186_v33 = vrot.slane %v2173_v28, 2 }
 0x7e4   :  { %v1188_v34 = vsub.f32 %v2623_v62, %v1186_v33 }
 0x844   :  { %v1178_v35 = vpop.permute.xlu1 %1177 }
 0x845   :  { %v1189_v36 = vmul.f32 %v1188_v34, %v1178_v35  ;;  %v1558_v35 = vstv %s2752_s8 }
 0x847   :  { %v1191_v40 = vrot.slane %v1189_v36, 6 }
 0x849   :  { %v2670_v48 = vadd.f32 %v2173_v28, %v1191_v40 }
 0x84b   :  { %v1195_v41 = vrot.slane %v2670_v48, 2 }
 0x84d   :  { %2069 = vmatmul.mubr.msk.f32.vlgmr.msra.gmra.mxu1 %vm164_vm3, %v1195_v41  ;;  %2088 = vmatmul.mubr.msk.f32.vlgmr.msra.gmra.mxu0 %vm164_vm3, %v1195_v41 }
 0x84e   :  { %2091 = vmatpush3.msra.mxu1 %v2243_v1  ;;  %2110 = vmatpush3.msra.mxu0 %v2279_v8 }
 0x84f   :  { %2092 = vmatprep.subr.mxu1 %v2186_v0  ;;  %2111 = vmatprep.subr.mxu0 %v2186_v0 }
 0x850   :  { %2093 = vmatpush3.msra.mxu1 %v2248_v2  ;;  %2112 = vmatpush3.msra.mxu0 %v2293_v10 }
 0x851   :  { %2094 = vmatprep.subr.mxu1 %v2186_v0  ;;  %2113 = vmatprep.subr.mxu0 %v2186_v0 }
 0x852   :  { %2095 = vmatpush3.msra.mxu1 %v2261_v4  ;;  %2114 = vmatpush3.msra.mxu0 %v2307_v12 }
 0x853   :  { %2096 = vmatprep.subr.mxu1 %v2186_v0  ;;  %2115 = vmatprep.subr.mxu0 %v2186_v0 }
 0x854   :  { %2097 = vmatpush3.msra.mxu1 %v2271_v7  ;;  %2116 = vmatpush3.msra.mxu0 %v2321_v14 }
 0x855   :  { %2098 = vmatprep.subr.mxu1 %v2186_v0  ;;  %2117 = vmatprep.subr.mxu0 %v2186_v0 }
 0x856   :  { %2099 = vmatpush3.msra.mxu1 %v2285_v9  ;;  %2118 = vmatpush3.msra.mxu0 %v2340_v17 }
 0x857   :  { %2100 = vmatprep.subr.mxu1 %v2186_v0  ;;  %2119 = vmatprep.subr.mxu0 %v2186_v0 }
 0x858   :  { %2101 = vmatpush3.msra.mxu1 %v2299_v11  ;;  %2120 = vmatpush3.msra.mxu0 %v2349_v18 }
 0x859   :  { %2102 = vmatprep.subr.mxu1 %v2186_v0  ;;  %2121 = vmatprep.subr.mxu0 %v2186_v0 }
 0x85a   :  { %2103 = vmatpush3.msra.mxu1 %v2313_v13  ;;  %2122 = vmatpush3.msra.mxu0 %v2362_v20 }
 0x85b   :  { %2104 = vmatprep.subr.mxu1 %v2186_v0  ;;  %2123 = vmatprep.subr.mxu0 %v2186_v0 }
 0x85c   :  { %2105 = vmatpush3.msra.mxu1 %v2327_v15  ;;  %2106 = vmatprep.mubr.msk.f32.mxu1 %vm2187_vm1, %v2186_v0 }
 0x85d   :  { %2124 = vmatpush3.msra.mxu0 %v2371_v21  ;;  %2125 = vmatprep.mubr.msk.f32.mxu0 %vm2187_vm1, %v2186_v0 }
 0x85e   :  { %2128 = vmatprep.subr.mxu1 %v2186_v0 }
 0x90d   :  { %v1264_v1 = vpop.f32.mrf.mxu1  ;;  %v1334_v2 = vpop.f32.mrf.mxu0 }
 0x90e   :  { %v1339_v4 = vrot.slane %v1264_v1, 4  ;;  %v1335_v13 = vadd.f32 %v2430_v44, %v1334_v2 }
 0x90f   :  { %v2070_v7 = vpop.f32.mrf.mxu1  ;;  %v2089_v8 = vpop.f32.mrf.mxu0 }
 0x910   :  { %v1341_v9 = vadd.f32 %v1339_v4, %v2423_v37  ;;  %v1354_v14 = vrot.slane %v1335_v13, 4 }
 0x912   :  { %v1670_v10 = vmul.f32 -1.442695, %v1341_v9 }
 0x914   :  { %2174 = vpow2.f32 %v1670_v10 }
 0x921   :  { %v2175_v11 = vpop.eup %2174 }
 0x922   :  { %v1345_v12 = vadd.f32 1.0, %v2175_v11 }
 0x924   :  { %2176 = vrcp.f32 %v1345_v12 }
 0x931   :  { %v2177_v15 = vpop.eup %2176 }
 0x932   :  { %v1356_v17 = vmul.f32 %v2177_v15, %v1354_v14  ;;  %v1349_v18 = vrot.slane %v2177_v15, 4 }
 0x934   :  { %1351 = vrot.lane.b32.xlu0 %v1349_v18, %s2188_s25  ;;  %v1357_v20 = vadd.f32 %v1356_v17, %v2425_v39 }
 0x936   :  { %2178 = vtanh.f32 %v1357_v20 }
 0x943   :  { %v2179_v21 = vpop.eup %2178 }
 0x944   :  { %v1360_v42 = vrot.slane %v2179_v21, 2 }
 0x946   :  { %v1362_v43 = vsub.f32 %v2670_v48, %v1360_v42 }
 0x948   :  { %v1364_v45 = vrot.slane %v1362_v43, 2 }
 0x9a6   :  { %v1352_v46 = vpop.permute.xlu0 %1351 }
 0x9a7   :  { %v1366_v47 = vmul.f32 %v1364_v45, %v1352_v46 }
 0x9a9   :  { %v1368_v49 = vrot.slane %v1366_v47, 4 }
 0x9ab   :  { %v1370_v50 = vadd.f32 %v2179_v21, %v1368_v49 }
 0x9ad   :  { %v1372_v51 = vrot.slane %v1370_v50, 4 }
 0x9af   :  { %2107 = vmatmul.mubr.msk.f32.vlgmr.msra.gmra.mxu1 %vm164_vm3, %v1372_v51  ;;  %2126 = vmatmul.mubr.msk.f32.vlgmr.msra.gmra.mxu0 %vm164_vm3, %v1372_v51 }
 0x9b0   :  { %2132 = vmatprep.mubr.msk.f32.mxu1 %vm2187_vm1, %v2186_v0 }
 0xa6f   :  { %v1441_v52 = vpop.f32.mrf.mxu1  ;;  %v1511_v53 = vpop.f32.mrf.mxu0 }
 0xa70   :  { %v1516_v55 = vrot.slane %v1441_v52, 2  ;;  %v1512_v3 = vadd.f32 %v2430_v44, %v1511_v53  ;;  %v1553_v44 = vsel %vm64_vm0, %v2623_v62, %v2670_v48  ;;  %v1556_v62 = vld [vmem:[%s2751_s7] sm:$0x1] }
 0xa71   :  { %v2108_v56 = vpop.f32.mrf.mxu1  ;;  %v2127_v57 = vpop.f32.mrf.mxu0  ;;  %v1554_v32 = vsel %vm1549_vm4, %v1553_v44, %v1370_v50 }
 0xa72   :  { %v1518_v58 = vadd.f32 %v1516_v55, %v2423_v37  ;;  %v1531_v5 = vrot.slane %v1512_v3, 2 }
 0xa74   :  { %v1673_v60 = vmul.f32 -1.442695, %v1518_v58 }
 0xa76   :  { %2180 = vpow2.f32 %v1673_v60 }
 0xa83   :  { %v2181_v61 = vpop.eup %2180 }
 0xa84   :  { %v1522_v63 = vadd.f32 1.0, %v2181_v61 }
 0xa86   :  { %2182 = vrcp.f32 %v1522_v63 }
 0xa93   :  { %v2183_v6 = vpop.eup %2182 }
 0xa94   :  { %v1533_v16 = vmul.f32 %v2183_v6, %v1531_v5  ;;  %v1526_v19 = vrot.slane %v2183_v6, 6 }
 0xa96   :  { %1528 = vrot.lane.b32.xlu1 %v1526_v19, %s2188_s25  ;;  %v1534_v22 = vadd.f32 %v1533_v16, %v2425_v39  ;;  %v1548_v39 = vsel %vm64_vm0, %v2438_v54, %v2485_v30 }
 0xa97   :  { %v1550_v33 = vsel %vm1549_vm4, %v1548_v39, %v2531_v59 }
 0xa98   :  { %2184 = vtanh.f32 %v1534_v22  ;;  %v1552_v34 = vsel %vm1551_vm5, %v1550_v33, %v2577_v38 }
 0xaa5   :  { %v2185_v23 = vpop.eup %2184 }
 0xaa6   :  { %v1537_v24 = vrot.slane %v2185_v23, 2 }
 0xaa8   :  { %v1539_v25 = vsub.f32 %v1370_v50, %v1537_v24 }
 0xaaa   :  { %v1541_v37 = vrot.slane %v1539_v25, 4 }
 0xb08   :  { %v1529_v26 = vpop.permute.xlu1 %1528 }
 0xb09   :  { %v1543_v27 = vmul.f32 %v1541_v37, %v1529_v26 }
 0xb0b   :  { %v1545_v29 = vrot.slane %v1543_v27, 2 }
 0xb0d   :  { %v1547_v31 = vadd.f32 %v2185_v23, %v1545_v29 }
 0xb0f   :  { %v1555_v28 = vsel %vm1551_vm5, %v1554_v32, %v1547_v31 }
 0xb10   :  { %2129 = vmatpush3.xpose.msk.msra.mxu1 %vm164_vm3, %v1555_v28 }
 0xb11   :  { %2130 = vmatprep.subr.mxu1 %v2186_v0 }
 0xb14   :  { %2131 = vmatpush3.xpose.msk.msra.mxu1 %vm164_vm3, %v1552_v34 }
 0xb17   :  { %2133 = vmatmul.mubr.msk.f32.vlgmr.msra.gmra.mxu1 %vm164_vm3, %v1556_v62 }
 0xbd7   :  { %v1634_v36 = vpop.f32.mrf.mxu1 }
 0xbd8   :  { %v1635_v54 = vadd.f32 %v1634_v36, %v1558_v35 }
 0xbd9   :  { %v2134_v0 = vpop.f32.mrf.mxu1 }
 0xbda   :  { %1639 = vst.msk [vmem:[%s2753_s9] sm:$0x1] %vm1638_vm6, %v1635_v54 }

</bundles_post_ra>
